<compile_context>
chip_gen: v7x
topology: tpu7x:2x2x1
jax: 0.10.0
libtpu: 0.0.40
codegen_flags: <defaults>
</compile_context>

<pallas_src>
import math
from functools import partial

import jax
import jax.numpy as jnp
from jax.experimental import pallas as pl
from jax.experimental.pallas import tpu as pltpu


# ---------------------------------------------------------------------------
# Generation-aware VMEM budget
# ---------------------------------------------------------------------------

def _phys_vmem_bytes() -> int:
    try:
        info = pltpu.get_tpu_info()
        v = getattr(info, "vmem_capacity_bytes", None)
        if v:
            return int(v)
    except Exception:
        pass
    return 64 * 1024 * 1024  # conservative (v7x-sized) fallback


_PHYS_VMEM = _phys_vmem_bytes()
# Scoped-VMEM limit: 3/4 of physical, capped at 96 MiB (=> 48 MiB on v7x's
# 64 MiB VMEM, 96 MiB on v5e/v6e's 128 MiB).
_VMEM_LIMIT = int(min((_PHYS_VMEM * 3) // 4, 96 * 1024 * 1024))


# ---------------------------------------------------------------------------
# Shared helpers for the elementwise kernels
# ---------------------------------------------------------------------------

def _lane_dense_2d(a: jax.Array) -> jax.Array:
    """Free (no-copy) reshape to a lane-dense 2-D view. No padding."""
    total = a.size
    for lanes in (1024, 512, 256, 128):
        if total % lanes == 0:
            return a.reshape(total // lanes, lanes)
    if a.ndim >= 2:
        return a.reshape(-1, a.shape[-1])   # last dim is the full-dim block
    return a.reshape(1, -1)


def _row_tiling(m: int, d: int, itemsize: int, n_arrays: int):
    """Largest VMEM-friendly row tile for an (m, d) elementwise kernel."""
    granule = {4: 8, 2: 16, 1: 32}.get(itemsize, 8)
    # n_arrays tensors, each double-buffered, plus slack for fn intermediates.
    tile_bytes = max(_VMEM_LIMIT // (2 * n_arrays + 2), 1 << 20)
    tile_rows = max(1, tile_bytes // max(1, d * itemsize))
    if tile_rows >= m:
        return m, 1                           # single full-dim block (legal)
    tile_rows = max(granule, (tile_rows // granule) * granule)
    return tile_rows, pl.cdiv(m, tile_rows)   # ragged last block -> masked


# ---------------------------------------------------------------------------
# Elementwise fn fused into the residual add:  out = fn(x) + x
# ---------------------------------------------------------------------------

def _elementwise_residual_kernel(x_ref, o_ref, *, fn):
    x = x_ref[...]
    o_ref[...] = (fn(x) + x).astype(o_ref.dtype)


def fused_elementwise_residual_pallas(x: jax.Array, fn) -> jax.Array:
    """out = fn(x) + x with fn traced inside the kernel (1 HBM read, 1 write)."""
    orig_shape = x.shape
    dtype = x.dtype
    itemsize = jnp.dtype(dtype).itemsize
    x2 = _lane_dense_2d(x)
    m, d = x2.shape
    tile_rows, grid_m = _row_tiling(m, d, itemsize, n_arrays=2)

    spec = pl.BlockSpec((tile_rows, d), lambda i: (i, 0))
    out2 = pl.pallas_call(
        partial(_elementwise_residual_kernel, fn=fn),
        out_shape=jax.ShapeDtypeStruct((m, d), dtype),
        grid_spec=pltpu.PrefetchScalarGridSpec(
            num_scalar_prefetch=0,
            grid=(grid_m,),
            in_specs=[spec],
            out_specs=spec,
        ),
        compiler_params=pltpu.CompilerParams(
            dimension_semantics=("parallel",),
            vmem_limit_bytes=_VMEM_LIMIT,
        ),
        cost_estimate=pl.CostEstimate(
            flops=2 * m * d,
            transcendentals=m * d,
            bytes_accessed=2 * m * d * itemsize,
        ),
    )(x2)
    return out2.reshape(orig_shape)


# ---------------------------------------------------------------------------
# Standalone residual add (arbitrary, non-fusable fn):  out = y + x
# ---------------------------------------------------------------------------

def _residual_add_kernel(y_ref, x_ref, o_ref):
    o_ref[...] = y_ref[...] + x_ref[...]


def residual_add_pallas(y: jax.Array, x: jax.Array) -> jax.Array:
    assert y.shape == x.shape and y.dtype == x.dtype
    orig_shape = y.shape
    dtype = y.dtype
    itemsize = jnp.dtype(dtype).itemsize
    y2 = _lane_dense_2d(y)
    x2 = _lane_dense_2d(x)
    m, d = y2.shape
    tile_rows, grid_m = _row_tiling(m, d, itemsize, n_arrays=3)

    spec = pl.BlockSpec((tile_rows, d), lambda i: (i, 0))
    out2 = pl.pallas_call(
        _residual_add_kernel,
        out_shape=jax.ShapeDtypeStruct((m, d), dtype),
        grid_spec=pltpu.PrefetchScalarGridSpec(
            num_scalar_prefetch=0,
            grid=(grid_m,),
            in_specs=[spec, spec],
            out_specs=spec,
        ),
        compiler_params=pltpu.CompilerParams(
            dimension_semantics=("parallel",),
            vmem_limit_bytes=_VMEM_LIMIT,
        ),
        cost_estimate=pl.CostEstimate(
            flops=m * d,
            transcendentals=0,
            bytes_accessed=3 * m * d * itemsize,
        ),
    )(y2, x2)
    return out2.reshape(orig_shape)


# ---------------------------------------------------------------------------
# Fused linear + residual:  out = x @ W + b + res in one pallas_call
# ---------------------------------------------------------------------------

def _fused_linear_residual_single_k_kernel(x_ref, w_ref, b_ref, res_ref, o_ref):
    # Full-depth K: no accumulator loop, no pl.when branching.
    acc = jnp.dot(x_ref[...], w_ref[...], preferred_element_type=jnp.float32)
    o_ref[...] = (acc
                  + b_ref[...].astype(jnp.float32)
                  + res_ref[...].astype(jnp.float32)).astype(o_ref.dtype)


def _fused_linear_residual_kernel(x_ref, w_ref, b_ref, res_ref, o_ref, acc_ref):
    k = pl.program_id(2)

    @pl.when(k == 0)
    def _():
        acc_ref[...] = jnp.zeros_like(acc_ref)

    acc_ref[...] += jnp.dot(x_ref[...], w_ref[...],
                            preferred_element_type=jnp.float32)

    # Epilogue: bias + residual added when the output tile is written — zero
    # extra HBM traffic for fn(x), no separate elementwise kernel.
    @pl.when(k == pl.num_programs(2) - 1)
    def _():
        o_ref[...] = (acc_ref[...]
                      + b_ref[...].astype(jnp.float32)
                      + res_ref[...].astype(jnp.float32)).astype(o_ref.dtype)


def _largest_aligned_divisor(dim: int, target: int, granule: int):
    """Largest multiple of `granule` that divides `dim` and is <= target."""
    t = min(target, dim)
    t = (t // granule) * granule
    while t >= granule:
        if dim % t == 0:
            return t
        t -= granule
    return None


def fused_linear_residual_pallas(x, w, b, res):
    """out = x @ w + b + res, residual fused into the matmul epilogue."""
    orig_shape = x.shape
    d = orig_shape[-1]
    e = w.shape[-1]
    m = math.prod(orig_shape[:-1]) if len(orig_shape) > 1 else 1
    dtype = x.dtype
    itemsize = jnp.dtype(dtype).itemsize

    x2 = x.reshape(m, d)
    res2 = res.reshape(m, e)
    b2 = b.reshape(1, e)

    # ---- tile selection -----------------------------------------------------
    # M: MXU-shaped 256-row tiles; ragged last block handled by the cdiv grid
    #    (writes masked) — no host-side padding of x/res, no tm=8 collapse.
    tm = 256 if m > 256 else m
    # N: lane-dense multiple of 128, up to 512 (ragged last N block is safe:
    #    out-of-range output columns are masked on write).
    tn = min(512, (e // 128) * 128) if e >= 128 else e
    # K: prefer the full depth (single-shot kernel).  K is a reduction, so a
    #    ragged K block would corrupt valid outputs — only split with an exact
    #    128-aligned divisor.
    tk = d

    budget = (_VMEM_LIMIT * 3) // 4

    def step_bytes(tm_, tk_, tn_, with_acc):
        bufs = (tm_ * tk_ + tk_ * tn_ + tn_ + 2 * tm_ * tn_) * itemsize
        return 2 * bufs + (tm_ * tn_ * 4 if with_acc else 0)

    if step_bytes(tm, tk, tn, False) > budget:
        split = _largest_aligned_divisor(d, 1024, 128)
        if split is not None and split < d:
            tk = split
        while tn > 128 and step_bytes(tm, tk, tn, tk < d) > budget:
            tn -= 128

    grid_m = pl.cdiv(m, tm)
    grid_n = pl.cdiv(e, tn)

    cost = pl.CostEstimate(
        flops=2 * m * d * e + 2 * m * e,
        transcendentals=0,
        bytes_accessed=(m * d + d * e + e + 2 * m * e) * itemsize,
    )
    out_shape = jax.ShapeDtypeStruct((m, e), dtype)

    # NOTE: output aliasing onto `res2` (input_output_aliases) only pays off
    # when the caller donates x; omitted here to avoid a defensive XLA copy.
    # TODO(synk): optionally cast x/W/res to bf16 (keeping f32 accumulation)
    # for higher MXU throughput when model tolerance allows.
    if tk == d:
        out2 = pl.pallas_call(
            _fused_linear_residual_single_k_kernel,
            out_shape=out_shape,
            grid_spec=pltpu.PrefetchScalarGridSpec(
                num_scalar_prefetch=0,
                grid=(grid_m, grid_n),
                in_specs=[
                    pl.BlockSpec((tm, d), lambda i, j: (i, 0)),   # x (full K)
                    pl.BlockSpec((d, tn), lambda i, j: (0, j)),   # W (full K)
                    pl.BlockSpec((1, tn), lambda i, j: (0, j)),   # bias
                    pl.BlockSpec((tm, tn), lambda i, j: (i, j)),  # residual
                ],
                out_specs=pl.BlockSpec((tm, tn), lambda i, j: (i, j)),
            ),
            compiler_params=pltpu.CompilerParams(
                dimension_semantics=("parallel", "parallel"),
                vmem_limit_bytes=_VMEM_LIMIT,
            ),
            cost_estimate=cost,
        )(x2, w, b2, res2)
    else:
        grid_k = d // tk
        out2 = pl.pallas_call(
            _fused_linear_residual_kernel,
            out_shape=out_shape,
            grid_spec=pltpu.PrefetchScalarGridSpec(
                num_scalar_prefetch=0,
                grid=(grid_m, grid_n, grid_k),
                in_specs=[
                    pl.BlockSpec((tm, tk), lambda i, j, k: (i, k)),   # x
                    pl.BlockSpec((tk, tn), lambda i, j, k: (k, j)),   # W
                    pl.BlockSpec((1, tn), lambda i, j, k: (0, j)),    # bias
                    pl.BlockSpec((tm, tn), lambda i, j, k: (i, j)),   # residual
                ],
                out_specs=pl.BlockSpec((tm, tn), lambda i, j, k: (i, j)),
                scratch_shapes=[pltpu.VMEM((tm, tn), jnp.float32)],
            ),
            compiler_params=pltpu.CompilerParams(
                dimension_semantics=("parallel", "parallel", "arbitrary"),
                vmem_limit_bytes=_VMEM_LIMIT,
            ),
            cost_estimate=cost,
        )(x2, w, b2, res2)

    return out2.reshape(orig_shape[:-1] + (e,))


# ---------------------------------------------------------------------------
# Module wrappers
# ---------------------------------------------------------------------------

class PallasLinear:
    """ViT-style sub-module: y = x @ W + b, with a residual-fusing entry point."""

    def __init__(self, w, b):
        self.w = w
        self.b = b

    def __call__(self, x):
        return jnp.einsum("...d,de->...e", x, self.w) + self.b

    def call_with_residual(self, x, res):
        return fused_linear_residual_pallas(x, self.w, self.b, res)


class ResidualAdd:
    """JAX/Pallas equivalent of the PyTorch ResidualAdd wrapper.

    Dispatch:
      * fn exposes `call_with_residual`  -> residual fused into fn's matmul.
      * fn marked elementwise            -> fn fused into the add kernel.
      * otherwise                        -> fn(x) in XLA + standalone add kernel.
    """

    def __init__(self, fn, *, elementwise: bool = False):
        self.fn = fn
        self.elementwise = elementwise or getattr(fn, "is_elementwise", False)

    def __call__(self, x, **kwargs):
        res = x
        if not kwargs and hasattr(self.fn, "call_with_residual"):
            return self.fn.call_with_residual(x, res)
        if self.elementwise:
            f = (lambda t: self.fn(t, **kwargs)) if kwargs else self.fn
            return fused_elementwise_residual_pallas(x, f)
        y = self.fn(x, **kwargs)
        return residual_add_pallas(y, res)


if __name__ == "__main__":
    key = jax.random.PRNGKey(0)
    k_x, k_w, k_b = jax.random.split(key, 3)

    B, N, D = 2, 8, 32  # batch, seq, hidden (small demo shapes)
    x = jax.random.normal(k_x, (B, N, D), dtype=jnp.float32)
    w = (jax.random.normal(k_w, (D, D), dtype=jnp.float32)
         / jnp.sqrt(jnp.asarray(D, jnp.float32)))
    b = jax.random.normal(k_b, (D,), dtype=jnp.float32) * 0.01

    # 1) Fused linear + residual: the add happens in the matmul epilogue.
    block_fused = ResidualAdd(PallasLinear(w, b))
    out_fused = jax.block_until_ready(block_fused(x))
    ref_fused = jnp.einsum("bnd,de->bne", x, w) + b + x
    assert out_fused.shape == x.shape and out_fused.dtype == x.dtype
    assert jnp.allclose(out_fused, ref_fused, atol=5e-3, rtol=5e-3)

    # 2) Elementwise fn fused into the residual-add kernel (x read once).
    block_gelu = ResidualAdd(jax.nn.gelu, elementwise=True)
    out_gelu = jax.block_until_ready(block_gelu(x))
    ref_gelu = jax.nn.gelu(x) + x
    assert out_gelu.shape == x.shape and out_gelu.dtype == x.dtype
    assert jnp.allclose(out_gelu, ref_gelu, atol=1e-4, rtol=1e-4)

    # 3) Arbitrary (non-elementwise) fn -> standalone lane-dense residual add.
    block_generic = ResidualAdd(lambda t: jax.nn.softmax(t, axis=-1))
    out_generic = jax.block_until_ready(block_generic(x))
    ref_generic = jax.nn.softmax(x, axis=-1) + x
    assert out_generic.shape == x.shape and out_generic.dtype == x.dtype
    assert jnp.allclose(out_generic, ref_generic, atol=1e-5, rtol=1e-5)

    print("KERNEL_OK")
</pallas_src>

<mosaic_0001>
module attributes {stable_mosaic.version = 11 : i64} {
  func.func @_fused_linear_residual_single_k_kernel(%arg0: i32, %arg1: i32, %arg2: memref<16x32xf32, #tpu.memory_space<vmem>>, %arg3: memref<32x32xf32, #tpu.memory_space<vmem>>, %arg4: memref<1x32xf32, #tpu.memory_space<vmem>>, %arg5: memref<16x32xf32, #tpu.memory_space<vmem>>, %arg6: memref<16x32xf32, #tpu.memory_space<vmem>>) attributes {dimension_semantics = [#tpu.dimension_semantics<parallel>, #tpu.dimension_semantics<parallel>], iteration_bounds = array<i64: 1, 1>, scalar_prefetch = 0 : i64, scratch_operands = 0 : i64, tpu.core_type = #tpu.core_type<tc>, window_params = [{transform_indices = @transform_0, window_bounds = array<i64: 16, 32>}, {transform_indices = @transform_1, window_bounds = array<i64: 32, 32>}, {transform_indices = @transform_2, window_bounds = array<i64: 1, 32>}, {transform_indices = @transform_3, window_bounds = array<i64: 16, 32>}, {transform_indices = @transform_4, window_bounds = array<i64: 16, 32>}]} {
    %c0 = arith.constant 0 : index
    %c0_0 = arith.constant 0 : index
    %0 = vector.load %arg2[%c0, %c0_0] : memref<16x32xf32, #tpu.memory_space<vmem>>, vector<16x32xf32>
    %c0_1 = arith.constant 0 : index
    %c0_2 = arith.constant 0 : index
    %1 = vector.load %arg3[%c0_1, %c0_2] : memref<32x32xf32, #tpu.memory_space<vmem>>, vector<32x32xf32>
    %cst = arith.constant dense<0.000000e+00> : vector<16x32xf32>
    %2 = tpu.matmul %0, %1, %cst {dimension_numbers = #tpu.dot_dimension_numbers<[1], [0], [0], [1], [0, 0, 1, 1], [], []>} : vector<16x32xf32>, vector<32x32xf32>, vector<16x32xf32> -> vector<16x32xf32>
    %c0_3 = arith.constant 0 : index
    %c0_4 = arith.constant 0 : index
    %3 = vector.load %arg4[%c0_3, %c0_4] : memref<1x32xf32, #tpu.memory_space<vmem>>, vector<1x32xf32>
    %4 = vector.broadcast %3 : vector<1x32xf32> to vector<16x32xf32>
    %5 = arith.addf %2, %4 : vector<16x32xf32>
    %c0_5 = arith.constant 0 : index
    %c0_6 = arith.constant 0 : index
    %6 = vector.load %arg5[%c0_5, %c0_6] : memref<16x32xf32, #tpu.memory_space<vmem>>, vector<16x32xf32>
    %7 = arith.addf %5, %6 : vector<16x32xf32>
    %c0_7 = arith.constant 0 : index
    %c0_8 = arith.constant 0 : index
    %8 = vector.load %arg6[%c0_7, %c0_8] : memref<16x32xf32, #tpu.memory_space<vmem>>, vector<16x32xf32>
    tpu.vector_store %arg6[%c0_7, %c0_8], %7 {strides = array<i32>} : memref<16x32xf32, #tpu.memory_space<vmem>>, vector<16x32xf32>,
    return
  }
  func.func @transform_0(%arg0: i32, %arg1: i32) -> (i32, i32) {
    %c0_i32 = arith.constant 0 : i32
    %c0_i32_0 = arith.constant 0 : i32
    return %arg0, %c0_i32 : i32, i32
  }
  func.func @transform_1(%arg0: i32, %arg1: i32) -> (i32, i32) {
    %c0_i32 = arith.constant 0 : i32
    %c0_i32_0 = arith.constant 0 : i32
    return %c0_i32, %arg1 : i32, i32
  }
  func.func @transform_2(%arg0: i32, %arg1: i32) -> (i32, i32) {
    %c0_i32 = arith.constant 0 : i32
    %c0_i32_0 = arith.constant 0 : i32
    return %c0_i32, %arg1 : i32, i32
  }
  func.func @transform_3(%arg0: i32, %arg1: i32) -> (i32, i32) {
    %c0_i32 = arith.constant 0 : i32
    return %arg0, %arg1 : i32, i32
  }
  func.func @transform_4(%arg0: i32, %arg1: i32) -> (i32, i32) {
    %c0_i32 = arith.constant 0 : i32
    return %arg0, %arg1 : i32, i32
  }
}

</mosaic_0001>

<bundles_post_ra>
// kernel: tpu_custom_call.1
= control target key start
LH: loop header
LB: loop body
LE: loop exit
PB: predicated region body
PF: predicated region fallthrough
CT: control target
= control target key end

     0   :  { %9 = vsyncpa [#allocation3], 0  ;;  %s411_s0 = inlined_call_operand.hbm [shape: f32[16,32], index: 0, kind: input, shape index: {}]   ;;  %s412_s1 = inlined_call_operand.hbm [shape: f32[32,32], index: 1, kind: input, shape index: {}]   ;;  %s413_s2 = inlined_call_operand.vmem [shape: f32[1,32], index: 2, kind: input, shape index: {}]   ;;  %s414_s3 = inlined_call_operand.hbm [shape: f32[16,32], index: 3, kind: input, shape index: {}]   ;;  %s415_s4 = inlined_call_operand.hbm [shape: f32[16,32], index: 4, kind: output, shape index: {}]  }
   0x1   :  { %10 = vsyncpa [#allocation6], 0 }
   0x2   :  { %11 = vsyncpa [#allocation4], 0  ;;  %s306_s15 = smov [#allocation5]   ;;  %s307_s17 = smov [#allocation2]  }
   0x3   :  { %s29_s16 = sshll.u32 %s306_s15, 4  ;;  %s17_s18 = sshll.u32 %s307_s17, 4  ;;  %s30_s16 = int_to_ptr.vmem [resolvable:$true] %s29_s16  ;;  %s337_s18 = int_to_ptr.vmem [resolvable:$true] %s17_s18 }
   0x4   :  { %s212_s21 = scalar_lea.hbm %s412_s1, 512 }
   0x5   :  { %p213_p0 = scmp.ne.s32.totalorder %s412_s1, %s212_s21  ;;  %p216_p1 = scmp.lt.u32.totalorder %s212_s21, %s412_s1 }
   0x7   :  { %p218_p2 = pnand %p216_p1, %p213_p0 }
   0x9   :  { %221 = shalt.err (!%p218_p2)
}
   0xa   :  { %s222_s26 = scalar_lea.vmem %s30_s16, 512  ;;  %p227_p4 = scmp.lt.s32.totalorder %s30_s16, %s30_s16 }
   0xb   :  { %p223_p3 = scmp.ne.s32.totalorder %s30_s16, %s222_s26  ;;  %p228_p5 = scmp.lt.s32.totalorder %s222_s26, %s222_s26 }
   0xd   :  { %p229_p6 = por %p228_p5, %p227_p4 }
   0xf   :  { %p230_p7 = pnand %p229_p6, %p223_p3 }
  0x11   :  { %233 = shalt.err (!%p230_p7)
}
  0x12   :  { %s308_s27 = smov 128   ;;  %s309_s28 = smov 8  }
  0x13   :  { %35 = dma.hbm_to_vmem [thread:$0]  %s412_s1, 512, %s30_s16, [#allocation6], %s308_s27, %s308_s27, %s309_s28  }
  0x14   :  { %s234_s7 = scalar_lea.hbm %s411_s0, 256 }
  0x15   :  { %p235_p8 = scmp.ne.s32.totalorder %s411_s0, %s234_s7  ;;  %p238_p9 = scmp.lt.u32.totalorder %s234_s7, %s411_s0 }
  0x17   :  { %p240_p10 = pnand %p238_p9, %p235_p8 }
  0x19   :  { %243 = shalt.err (!%p240_p10)
}
  0x1a   :  { %s244_s12 = scalar_lea.vmem %s337_s18, 256  ;;  %p249_p12 = scmp.lt.s32.totalorder %s337_s18, %s337_s18 }
  0x1b   :  { %p245_p11 = scmp.ne.s32.totalorder %s337_s18, %s244_s12  ;;  %p250_p13 = scmp.lt.s32.totalorder %s244_s12, %s244_s12 }
  0x1d   :  { %p251_p0 = por %p250_p13, %p249_p12 }
  0x1f   :  { %p252_p1 = pnand %p251_p0, %p245_p11 }
  0x21   :  { %255 = shalt.err (!%p252_p1)
}
  0x22   :  { %23 = dma.hbm_to_vmem [thread:$0]  %s411_s0, 256, %s337_s18, [#allocation3], %s308_s27, %s308_s27, %s309_s28  }
  0x23   :  { %s310_s14 = smov [#allocation7]   ;;  %s256_s19 = scalar_lea.hbm %s414_s3, 256 }
  0x24   :  { %s43_s15 = sshll.u32 %s310_s14, 4  ;;  %p257_p2 = scmp.ne.s32.totalorder %s414_s3, %s256_s19  ;;  %s44_s15 = int_to_ptr.vmem [resolvable:$true] %s43_s15 }
  0x25   :  { %p260_p3 = scmp.lt.u32.totalorder %s256_s19, %s414_s3 }
  0x27   :  { %p262_p4 = pnand %p260_p3, %p257_p2 }
  0x29   :  { %265 = shalt.err (!%p262_p4)
}
  0x2a   :  { %s266_s24 = scalar_lea.vmem %s44_s15, 256  ;;  %p271_p6 = scmp.lt.s32.totalorder %s44_s15, %s44_s15 }
  0x2b   :  { %p267_p5 = scmp.ne.s32.totalorder %s44_s15, %s266_s24  ;;  %p272_p7 = scmp.lt.s32.totalorder %s266_s24, %s266_s24 }
  0x2d   :  { %p273_p8 = por %p272_p7, %p271_p6 }
  0x2f   :  { %p274_p9 = pnand %p273_p8, %p267_p5 }
  0x31   :  { %277 = shalt.err (!%p274_p9)
}
  0x32   :  { %49 = dma.hbm_to_vmem [thread:$0]  %s414_s3, 256, %s44_s15, [#allocation6], %s308_s27, %s308_s27, %s309_s28  }
  0x33   :  { %300 = dma.done.wait [#allocation3], 256  }
  0x34   :  { %301 = vsyncadd [#allocation3], 4294967040 }
  0x35   :  { %302 = dma.done.wait [#allocation6], 768  }
  0x36   :  { %303 = vsyncadd [#allocation6], 4294966528  ;;  %vm72_vm0 = vcmask 261120   ;;  %v61_v0 = vld [vmem:[#allocation5] sm:$0xff]  ;;  %v62_v1 = vld [vmem:[#allocation5 + $0x8] sm:$0xff]  ;;  %s311_s26 = smov [#allocation8]  }
  0x37   :  { %v63_v2 = vld [vmem:[#allocation5 + $0x10] sm:$0xff]  ;;  %v198_v3 = vpack.c.bf16 %v62_v1, %v61_v0  ;;  %v64_v4 = vld [vmem:[#allocation5 + $0x18] sm:$0xff]  ;;  %v155_v10 = vld [vmem:[#allocation7 + $0x8] sm:$0xff]  ;;  %s165_s29 = sshll.u32 %s311_s26, 4  ;;  %s166_s29 = int_to_ptr.vmem [resolvable:$true] %s165_s29 }
  0x38   :  { %v59_v5 = vld [vmem:[#allocation2] sm:$0xff]  ;;  %v202_v6 = vpack.c.bf16 %v64_v4, %v63_v2  ;;  %v60_v7 = vld [vmem:[#allocation2 + $0x8] sm:$0xff]  ;;  %v154_v13 = vld [vmem:[#allocation7] sm:$0xff]  ;;  %s278_s30 = scalar_lea.vmem %s166_s29, 256  ;;  %p283_p11 = scmp.lt.s32.totalorder %s166_s29, %s166_s29 }
  0x39   :  { %195 = vmatprep.mubr.msk.f32.mxu0 %vm72_vm0, %v59_v5  ;;  %199 = vmatprep.subr.bf16.mxu0 %v198_v3  ;;  %v178_v8 = vld [vmem:[%s413_s2] ss:$0 sm:$0xff]  ;;  %p279_p10 = scmp.ne.s32.totalorder %s166_s29, %s278_s30  ;;  %p284_p12 = scmp.lt.s32.totalorder %s278_s30, %s278_s30 }
  0x3a   :  { %201 = vmatpush3.bf16.msra.mxu0 %v198_v3 }
  0x3b   :  { %203 = vmatprep.subr.bf16.mxu0 %v202_v6  ;;  %p285_p13 = por %p284_p12, %p283_p11 }
  0x3d   :  { %p286_p0 = pnand %p285_p13, %p279_p10 }
  0x3e   :  { %205 = vmatpush3.bf16.msra.mxu0 %v202_v6 }
  0x41   :  { %196 = vmatmul.mubr.msk.f32.vlgmr.msra.gmra.mrb[0].mxu0 %vm72_vm0, %v60_v7 }
 0x114   :  { %v197_v9 = vpop.f32.mrb[0].mxu0 }
 0x115   :  { %v151_v11 = vadd.f32 %v197_v9, %v178_v8  ;;  %v145_v12 = vpop.f32.mrb[1].mxu0 }
 0x116   :  { %v146_v14 = vadd.f32 %v178_v8, %v145_v12 }
 0x117   :  { %v157_v15 = vadd.f32 %v155_v10, %v151_v11 }
 0x118   :  { %v156_v16 = vadd.f32 %v154_v13, %v146_v14 }
 0x119   :  { %159 = vst.msk [vmem:[#allocation8 + $0x8] sm:$0xff] %vm72_vm0, %v157_v15 }
 0x11a   :  { %158 = vst.msk [vmem:[#allocation8] sm:$0xff] %vm72_vm0, %v156_v16 }
 0x11b   :  { %289 = shalt.err (!%p286_p0)
}
 0x11c   :  { %s290_s6 = scalar_lea.hbm %s415_s4, 256 }
 0x11d   :  { %p291_p1 = scmp.ne.s32.totalorder %s415_s4, %s290_s6  ;;  %p294_p2 = scmp.lt.u32.totalorder %s290_s6, %s415_s4 }
 0x11f   :  { %p296_p3 = pnand %p294_p2, %p291_p1 }
 0x121   :  { %299 = shalt.err (!%p296_p3)
}
 0x122   :  { %171 = dma.vmem_to_hbm [thread:$0]  %s166_s29, 256, %s415_s4, [#allocation4], %s308_s27, %s308_s27, %s309_s28  }
 0x123   :  { %304 = dma.done.wait [#allocation4], 256  }
 0x124   :  { %305 = vsyncadd [#allocation4], 4294967040 }
 0x125   :  { %175 = vsyncpa [#allocation3], 1 }
 0x126   :  { %176 = vsyncpa [#allocation6], 1 }
 0x127   :  { %177 = vsyncpa [#allocation4], 1 }

</bundles_post_ra>
